<compile_context>
chip_gen: v6e
topology: v6e:2x2x1
jax: 0.10.0
libtpu: 0.0.40
codegen_flags: <defaults>
</compile_context>

<pallas_src>
import jax
import jax.numpy as jnp
from jax.experimental import pallas as pl
from jax.experimental.pallas import tpu as pltpu

# Below this, fused XLA beats the pallas_call launch / pipeline overhead.
_SMALL_ELEMS = 64 * 1024
_MIN_LANES = 128


def _modrelu_kernel(x_ref, b_ref, o_ref):
    xr = x_ref[0]                           # (tb, tn) float32, real plane
    xi = x_ref[1]                           # (tb, tn) float32, imag plane
    b = b_ref[...]                          # (1, tn)  float32, broadcasts over rows

    mag2 = xr * xr + xi * xi                # |z|^2
    nonzero = mag2 > 0.0
    inv_mag = jax.lax.rsqrt(jnp.where(nonzero, mag2, 1.0))      # 1/|z| (safe at 0)
    # ReLU(|z| + b) / |z| == max(1 + b/|z|, 0) for |z| > 0; output is 0 at |z| == 0.
    scale = jnp.where(nonzero, jnp.maximum(1.0 + b * inv_mag, 0.0), 0.0)

    o_ref[0] = scale * xr
    o_ref[1] = scale * xi


def _modrelu_jnp(x_planar, bias):
    """Fused XLA fallback for tiny shapes. x_planar: (2, B, N) float32."""
    xr, xi = x_planar[0], x_planar[1]
    mag2 = xr * xr + xi * xi
    nonzero = mag2 > 0.0
    inv_mag = jax.lax.rsqrt(jnp.where(nonzero, mag2, 1.0))
    scale = jnp.where(nonzero, jnp.maximum(1.0 + bias * inv_mag, 0.0), 0.0)
    return jnp.stack([scale * xr, scale * xi], axis=0)


def _select_tiling(B, N):
    """Generation-aware (tb, tn, vmem_limit_bytes)."""
    tb_pref, tn_pref = 512, 2048            # ~16 MiB per step: v6e / v7x
    try:
        kind = jax.devices()[0].device_kind.lower()
    except Exception:
        kind = ""
    if any(g in kind for g in ("v2", "v3", "v4", "v5")):
        tb_pref = 256                       # ~8 MiB per step is plenty at <= ~1 TB/s

    tb = B if B <= tb_pref else tb_pref
    tn = N if N <= tn_pref else tn_pref

    # Ensure >= 2 grid steps when possible so v7x's two TensorCores both get
    # work; keep the lane tile a multiple of 128. Harmless on single-TC chips.
    if pl.cdiv(B, tb) * pl.cdiv(N, tn) < 2 and N >= 2 * 128:
        half = -(-N // 2)
        tn = 128 * (-(-half // 128))

    # Double-buffered working set: (in + out) blocks of (2, tb, tn) f32
    # x 2 buffers, plus the (1, tn) bias.  +8 MiB headroom, capped at 40 MiB
    # (well under v7x's 64 MiB physical VMEM, above v5e's 16 MiB default).
    working = 2 * 2 * (2 * tb * tn * 4) + 2 * (tn * 4)
    vmem_limit = min(working + 8 * 1024 * 1024, 40 * 1024 * 1024)
    return tb, tn, vmem_limit


def cmod_relu_planar(x_planar, bias, *, force_pallas=False):
    """modReLU on planar input.

    x_planar: (2, B, N) float32 — stacked [real, imag] planes.
    bias:     (1, N) or (N,) float.
    Returns:  (2, B, N) float32 stacked [real, imag] planes.
    """
    x_planar = jnp.asarray(x_planar, jnp.float32)
    _, B, N = x_planar.shape
    bias = jnp.asarray(bias, dtype=jnp.float32).reshape(1, N)

    if not force_pallas and (N < _MIN_LANES or B * N < _SMALL_ELEMS):
        return _modrelu_jnp(x_planar, bias)

    tb, tn, vmem_limit = _select_tiling(B, N)
    grid = (pl.cdiv(B, tb), pl.cdiv(N, tn))

    return pl.pallas_call(
        _modrelu_kernel,
        out_shape=jax.ShapeDtypeStruct((2, B, N), jnp.float32),
        grid=grid,
        in_specs=[
            pl.BlockSpec((2, tb, tn), lambda i, j: (0, i, j)),
            pl.BlockSpec((1, tn), lambda i, j: (0, j)),
        ],
        out_specs=pl.BlockSpec((2, tb, tn), lambda i, j: (0, i, j)),
        compiler_params=pltpu.CompilerParams(
            dimension_semantics=("parallel", "parallel"),
            vmem_limit_bytes=vmem_limit,
        ),
    )(x_planar, bias)


def cmod_relu(x_complex, bias, *, force_pallas=False):
    """complex64 convenience wrapper: (B, N) complex64 -> (B, N) complex64.

    Prefer cmod_relu_planar in a planar-f32 model to avoid even the single
    stack/unstack fusion around the kernel.
    """
    # TODO(synk): fold the complex64 <-> planar layout into the kernel once a
    # complex bitcast / complex VMEM type is available in Mosaic.
    x_planar = jnp.stack(
        [jnp.real(x_complex).astype(jnp.float32),
         jnp.imag(x_complex).astype(jnp.float32)], axis=0)
    out = cmod_relu_planar(x_planar, bias, force_pallas=force_pallas)
    return jax.lax.complex(out[0], out[1])


def _reference(x_complex, bias):
    bias = jnp.asarray(bias, jnp.float32).reshape(1, x_complex.shape[-1])
    mag = jnp.abs(x_complex)
    act = jnp.maximum(mag + bias, 0.0)
    scale = jnp.where(mag > 0.0, act / jnp.where(mag > 0.0, mag, 1.0), 0.0)
    return (scale * x_complex).astype(jnp.complex64)


def _check(key, batch, input_size, force_pallas=False):
    kr, ki, kb = jax.random.split(key, 3)
    x_re = jax.random.normal(kr, (batch, input_size), dtype=jnp.float32)
    x_im = jax.random.normal(ki, (batch, input_size), dtype=jnp.float32)
    x = jax.lax.complex(x_re, x_im)
    # Exercise the |z| == 0 branch explicitly.
    x = x.at[0, 0].set(0.0 + 0.0j)
    # Module __init__ uses zeros((1, input_size)); perturb deterministically so
    # the ReLU gate is actually exercised.
    bias = 0.1 * jax.random.normal(kb, (1, input_size), dtype=jnp.float32)

    out = cmod_relu(x, bias, force_pallas=force_pallas)
    jax.block_until_ready(out)

    ref = _reference(x, bias)
    assert jnp.allclose(out, ref, atol=1e-5, rtol=1e-5), (
        f"mismatch vs reference at shape {(batch, input_size)} "
        f"(force_pallas={force_pallas})")


if __name__ == "__main__":
    key = jax.random.PRNGKey(0)
    k_small, k_mid, k_big = jax.random.split(key, 3)

    # Module-consistent small shape (batch=2, input_size=32): fused-XLA
    # fallback path, plus the Pallas path forced once (single full-array block).
    _check(k_small, batch=2, input_size=32)
    _check(k_small, batch=2, input_size=32, force_pallas=True)

    # Shape whose preferred tiling would give a 1-step grid: exercises the
    # lane-split path that guarantees >=2 parallel steps for v7x's two cores.
    _check(k_mid, batch=128, input_size=2048)

    # Shape that exercises the tiled 2-D grid including ragged edge blocks
    # (520 = 512 + 8 rows, 2560 = 2048 + 512 lanes on v6e/v7x tiling).
    _check(k_big, batch=520, input_size=2560)

    print("KERNEL_OK")
</pallas_src>

<mosaic_0001>
module attributes {stable_mosaic.version = 11 : i64} {
  func.func @_modrelu_kernel(%arg0: i32, %arg1: i32, %arg2: memref<2x2x32xf32, #tpu.memory_space<vmem>>, %arg3: memref<1x32xf32, #tpu.memory_space<vmem>>, %arg4: memref<2x2x32xf32, #tpu.memory_space<vmem>>) attributes {dimension_semantics = [#tpu.dimension_semantics<parallel>, #tpu.dimension_semantics<parallel>], iteration_bounds = array<i64: 1, 1>, scalar_prefetch = 0 : i64, scratch_operands = 0 : i64, tpu.core_type = #tpu.core_type<tc>, window_params = [{transform_indices = @transform_0, window_bounds = array<i64: 2, 2, 32>}, {transform_indices = @transform_1, window_bounds = array<i64: 1, 32>}, {transform_indices = @transform_2, window_bounds = array<i64: 2, 2, 32>}]} {
    %c0 = arith.constant 0 : index
    %c0_0 = arith.constant 0 : index
    %c0_1 = arith.constant 0 : index
    %0 = vector.load %arg2[%c0, %c0_0, %c0_1] : memref<2x2x32xf32, #tpu.memory_space<vmem>>, vector<1x2x32xf32>
    %1 = vector.shape_cast %0 : vector<1x2x32xf32> to vector<2x32xf32>
    %c1 = arith.constant 1 : index
    %c0_2 = arith.constant 0 : index
    %c0_3 = arith.constant 0 : index
    %2 = vector.load %arg2[%c1, %c0_2, %c0_3] : memref<2x2x32xf32, #tpu.memory_space<vmem>>, vector<1x2x32xf32>
    %3 = vector.shape_cast %2 : vector<1x2x32xf32> to vector<2x32xf32>
    %c0_4 = arith.constant 0 : index
    %c0_5 = arith.constant 0 : index
    %4 = vector.load %arg3[%c0_4, %c0_5] : memref<1x32xf32, #tpu.memory_space<vmem>>, vector<1x32xf32>
    %5 = arith.mulf %1, %1 : vector<2x32xf32>
    %6 = arith.mulf %3, %3 : vector<2x32xf32>
    %7 = arith.addf %5, %6 : vector<2x32xf32>
    %cst = arith.constant 0.000000e+00 : f32
    %8 = vector.broadcast %cst : f32 to vector<2x32xf32>
    %9 = arith.cmpf ogt, %7, %8 : vector<2x32xf32>
    %cst_6 = arith.constant 1.000000e+00 : f32
    %10 = vector.broadcast %cst_6 : f32 to vector<2x32xf32>
    %11 = arith.select %9, %7, %10 : vector<2x32xi1>, vector<2x32xf32>
    %12 = math.rsqrt %11 : vector<2x32xf32>
    %13 = vector.broadcast %4 : vector<1x32xf32> to vector<2x32xf32>
    %14 = arith.mulf %13, %12 : vector<2x32xf32>
    %cst_7 = arith.constant 1.000000e+00 : f32
    %15 = vector.broadcast %cst_7 : f32 to vector<2x32xf32>
    %16 = arith.addf %15, %14 : vector<2x32xf32>
    %cst_8 = arith.constant 0.000000e+00 : f32
    %17 = vector.broadcast %cst_8 : f32 to vector<2x32xf32>
    %18 = arith.maximumf %16, %17 : vector<2x32xf32>
    %cst_9 = arith.constant 0.000000e+00 : f32
    %19 = vector.broadcast %cst_9 : f32 to vector<2x32xf32>
    %20 = arith.select %9, %18, %19 : vector<2x32xi1>, vector<2x32xf32>
    %21 = arith.mulf %20, %1 : vector<2x32xf32>
    %c0_10 = arith.constant 0 : index
    %c0_11 = arith.constant 0 : index
    %c0_12 = arith.constant 0 : index
    %22 = vector.load %arg4[%c0_10, %c0_11, %c0_12] : memref<2x2x32xf32, #tpu.memory_space<vmem>>, vector<1x2x32xf32>
    %23 = vector.shape_cast %22 : vector<1x2x32xf32> to vector<2x32xf32>
    %24 = vector.shape_cast %21 : vector<2x32xf32> to vector<1x2x32xf32>
    tpu.vector_store %arg4[%c0_10, %c0_11, %c0_12], %24 {strides = array<i32>} : memref<2x2x32xf32, #tpu.memory_space<vmem>>, vector<1x2x32xf32>,
    %25 = arith.mulf %20, %3 : vector<2x32xf32>
    %c1_13 = arith.constant 1 : index
    %c0_14 = arith.constant 0 : index
    %c0_15 = arith.constant 0 : index
    %26 = vector.load %arg4[%c1_13, %c0_14, %c0_15] : memref<2x2x32xf32, #tpu.memory_space<vmem>>, vector<1x2x32xf32>
    %27 = vector.shape_cast %26 : vector<1x2x32xf32> to vector<2x32xf32>
    %28 = vector.shape_cast %25 : vector<2x32xf32> to vector<1x2x32xf32>
    tpu.vector_store %arg4[%c1_13, %c0_14, %c0_15], %28 {strides = array<i32>} : memref<2x2x32xf32, #tpu.memory_space<vmem>>, vector<1x2x32xf32>,
    return
  }
  func.func @transform_0(%arg0: i32, %arg1: i32) -> (i32, i32, i32) {
    %c0_i32 = arith.constant 0 : i32
    %c0_i32_0 = arith.constant 0 : i32
    return %c0_i32, %arg0, %arg1 : i32, i32, i32
  }
  func.func @transform_1(%arg0: i32, %arg1: i32) -> (i32, i32) {
    %c0_i32 = arith.constant 0 : i32
    %c0_i32_0 = arith.constant 0 : i32
    return %c0_i32, %arg1 : i32, i32
  }
  func.func @transform_2(%arg0: i32, %arg1: i32) -> (i32, i32, i32) {
    %c0_i32 = arith.constant 0 : i32
    %c0_i32_0 = arith.constant 0 : i32
    return %c0_i32, %arg0, %arg1 : i32, i32, i32
  }
}

</mosaic_0001>

<bundles_post_ra>
// kernel: tpu_custom_call.1
= control target key start
LH: loop header
LB: loop body
LE: loop exit
PB: predicated region body
PF: predicated region fallthrough
CT: control target
= control target key end

     0   :  { %7 = vsyncpa [#allocation3], 0  ;;  %s154_s0 = inlined_call_operand.hbm [shape: f32[2,2,32], index: 0, kind: input, shape index: {}]   ;;  %s155_s1 = inlined_call_operand.vmem [shape: f32[1,32], index: 1, kind: input, shape index: {}]   ;;  %s156_s2 = inlined_call_operand.hbm [shape: f32[2,2,32], index: 2, kind: output, shape index: {}]  }
   0x1   :  { %8 = vsyncpa [#allocation4], 0  ;;  %s120_s9 = smov [#allocation2]  }
   0x2   :  { %s14_s10 = sshll.u32 %s120_s9, 4  ;;  %s15_s10 = int_to_ptr.vmem [resolvable:$true] %s14_s10 }
   0x3   :  { %s84_s11 = scalar_lea.vmem %s15_s10, 64  ;;  %p89_p1 = scmp.lt.s32.totalorder %s15_s10, %s15_s10 }
   0x4   :  { %p85_p0 = scmp.ne.s32.totalorder %s15_s10, %s84_s11  ;;  %p90_p2 = scmp.lt.s32.totalorder %s84_s11, %s84_s11 }
   0x6   :  { %p91_p3 = por %p90_p2, %p89_p1 }
   0x8   :  { %p92_p4 = pnand %p91_p3, %p85_p0 }
   0xa   :  { %95 = shalt.err (!%p92_p4)
}
   0xb   :  { %s121_s12 = smov 32   ;;  %s122_s13 = smov 2  }
   0xc   :  { %20 = dma.hbm_to_vmem [thread:$0]  %s154_s0, 64, %s15_s10, [#allocation3], %s121_s12, %s121_s12, %s122_s13  }
   0xd   :  { %116 = dma.done.wait [#allocation3], 64  }
   0xe   :  { %117 = vsyncadd [#allocation3], 4294967232  ;;  %v26_v0 = vld [vmem:[#allocation2] sm:$0x3]  ;;  %v28_v1 = vld [vmem:[#allocation2 + $0x2] sm:$0x3] }
   0xf   :  { %v30_v2 = vmul.f32 %v26_v0, %v26_v0  ;;  %v31_v3 = vmul.f32 %v28_v1, %v28_v1  ;;  %v69_v6 = vld [vmem:[%s155_s1] ss:$0 sm:$0xff]  ;;  %s123_s18 = smov [#allocation5]   ;;  %vm47_vm1 = vcmask 254976  }
  0x10   :  { %s57_s0 = sshll.u32 %s123_s18, 4  ;;  %s58_s0 = int_to_ptr.vmem [resolvable:$true] %s57_s0 }
  0x11   :  { %v32_v4 = vadd.f32 %v31_v3, %v30_v2  ;;  %s96_s19 = scalar_lea.vmem %s58_s0, 64  ;;  %p101_p6 = scmp.lt.s32.totalorder %s58_s0, %s58_s0 }
  0x12   :  { %p97_p5 = scmp.ne.s32.totalorder %s58_s0, %s96_s19  ;;  %p102_p7 = scmp.lt.s32.totalorder %s96_s19, %s96_s19 }
  0x13   :  { %vm33_vm0 = vcmp.gt.f32.partialorder %v32_v4, 0.0 }
  0x14   :  { %v34_v5 = vsel %vm33_vm0, %v32_v4, 1.0  ;;  %p103_p8 = por %p102_p7, %p101_p6 }
  0x15   :  { %74 = vrsqrt.f32 %v34_v5 }
  0x16   :  { %p104_p9 = pnand %p103_p8, %p97_p5 }
  0x22   :  { %v75_v7 = vpop.eup %74 }
  0x23   :  { %v42_v8 = vmul.f32 %v75_v7, %v69_v6 }
  0x25   :  { %v43_v9 = vadd.f32 1.0, %v42_v8 }
  0x27   :  { %v44_v10 = vmax.f32 %v43_v9, 0.0 }
  0x29   :  { %v45_v11 = vsel %vm33_vm0, %v44_v10, 0.0 }
  0x2a   :  { %v46_v12 = vmul.f32 %v45_v11, %v26_v0  ;;  %v49_v13 = vmul.f32 %v45_v11, %v28_v1 }
  0x2c   :  { %48 = vst.msk [vmem:[#allocation5] sm:$0x3] %vm47_vm1, %v46_v12  ;;  %51 = vst.msk [vmem:[#allocation5 + $0x2] sm:$0x3] %vm47_vm1, %v49_v13 }
  0x2d   :  { %107 = shalt.err (!%p104_p9)
}
  0x2e   :  { %63 = dma.vmem_to_hbm [thread:$0]  %s58_s0, 64, %s156_s2, [#allocation4], %s121_s12, %s121_s12, %s122_s13  }
  0x2f   :  { %118 = dma.done.wait [#allocation4], 64  }
  0x30   :  { %119 = vsyncadd [#allocation4], 4294967232 }
  0x31   :  { %67 = vsyncpa [#allocation3], 1 }
  0x32   :  { %68 = vsyncpa [#allocation4], 1 }

</bundles_post_ra>
